<compile_context>
chip_gen: v6e
topology: v6e:2x2x1
jax: 0.10.0
libtpu: 0.0.40
codegen_flags: <defaults>
</compile_context>

<pallas_src>
import functools

import jax
import jax.numpy as jnp
from jax import lax
from jax.experimental import pallas as pl
from jax.experimental.pallas import tpu as pltpu


def _ica_kernel(q_in_ref, kv_in_ref,
                wq_ref, bq_ref,      # fused query proj   (Dq, E), (1, E)   [1/sqrt(hd) folded in]
                wkv_ref, bkv_ref,    # fused k|v proj     (E, 2E), (1, 2E)
                wo_ref, bo_ref,      # MHA out proj       (E, E),  (1, E)
                out_ref,
                *, num_heads):
    bt, L, Dq = q_in_ref.shape
    _, S, E = kv_in_ref.shape
    hd = E // num_heads
    cdt = q_in_ref.dtype                     # matmul-operand dtype (bf16 by default)

    # ---- fused projections: one MXU matmul for q, one for k|v, f32 accumulation ----
    q_flat = q_in_ref[...].reshape(bt * L, Dq)            # (bt*L, Dq)
    kv_flat = kv_in_ref[...].reshape(bt * S, E)           # (bt*S, E)
    qp = jnp.dot(q_flat, wq_ref[...],
                 preferred_element_type=jnp.float32) + bq_ref[...]     # (bt*L, E), pre-scaled
    kvp = jnp.dot(kv_flat, wkv_ref[...],
                  preferred_element_type=jnp.float32) + bkv_ref[...]   # (bt*S, 2E)
    kp = kvp[:, :E]                                       # lane-aligned split (offset 128)
    vp = kvp[:, E:]

    wo = wo_ref[...]                                      # (E, E), loaded once
    bias_out = jnp.broadcast_to(bo_ref[...], (L, E))      # broadcast hoisted out of the loops

    # ---- per-batch, per-head scaled-dot-product attention (small, fully unrolled) ----
    for b in range(bt):
        qp_b = qp[b * L:(b + 1) * L]                      # (L, E)  sublane-aligned row slice
        kp_b = kp[b * S:(b + 1) * S]                      # (S, E)
        vp_b = vp[b * S:(b + 1) * S]                      # (S, E)
        acc = bias_out                                    # accumulate b_out + sum_h ctx_h @ W_out[h]
        for h in range(num_heads):
            hs = slice(h * hd, (h + 1) * hd)
            qh = qp_b[:, hs].astype(cdt)                  # (L, hd)   (scale already folded)
            kh = kp_b[:, hs].astype(cdt)                  # (S, hd)
            vh = vp_b[:, hs].astype(cdt)                  # (S, hd)
            # scores = qh @ kh^T  (contract head dim, no explicit transpose)
            s = lax.dot_general(qh, kh, (((1,), (1,)), ((), ())),
                                preferred_element_type=jnp.float32)    # (L, S) f32
            s = s - jnp.max(s, axis=-1, keepdims=True)                 # f32 softmax math
            p = jnp.exp(s)
            p = p * pl.reciprocal(jnp.sum(p, axis=-1, keepdims=True), approx=True)
            ctx_h = jnp.dot(p.astype(cdt), vh,
                            preferred_element_type=jnp.float32)        # (L, hd)
            # per-head out-projection accumulation through sublane-aligned W_out rows
            # (replaces the lane-offset concatenate of the previous revision).
            acc = acc + jnp.dot(ctx_h.astype(cdt), wo[hs, :],
                                preferred_element_type=jnp.float32)    # (L, E)
        out_ref[b] = acc.astype(out_ref.dtype)


def _choose_batch_tile(B, rows):
    """Largest divisor bt of B with bt*rows <= 128 projection rows per step,
    preferring >= 2 grid steps whenever B >= 2 (keeps both v7x TensorCores busy)."""
    best = 1
    for bt in range(1, B + 1):
        if B % bt:
            continue
        if bt * rows > 128:
            break
        if B // bt >= 2 or B == 1:
            best = bt
    return best


def inverted_cross_attention(x_query, x_key_value, params, num_heads,
                             *, compute_dtype=jnp.bfloat16):
    B, Cq, Hq, Wq = x_query.shape
    Bk, Ckv, Hk, Wk = x_key_value.shape
    Dq = Hq * Wq                 # in_channels_q
    E = Hk * Wk                  # in_channels_kv == MHA embed dim
    L, S = Cq, Ckv
    # The trailing PyTorch `.view(B_kv, C_kv, H_kv, W_kv)` silently requires these:
    assert B == Bk, "query / key_value batch mismatch"
    assert Cq == Ckv, "out.view(B_kv, C_kv, ...) requires C_q == C_kv"
    assert E % num_heads == 0, "embed dim must be divisible by num_heads"
    hd = E // num_heads
    scale = 1.0 / float(hd) ** 0.5

    # ---- offline weight folding (in f32, before any bf16 cast) ----
    w_in, b_in = params["w_in"], params["b_in"]                    # (E, 3E), (1, 3E)
    w_in_q, w_in_k, w_in_v = w_in[:, :E], w_in[:, E:2 * E], w_in[:, 2 * E:]
    b_in_q, b_in_k, b_in_v = b_in[:, :E], b_in[:, E:2 * E], b_in[:, 2 * E:]

    wq_f = (params["w_query"] @ w_in_q) * scale                    # (Dq, E)  scale folded in
    bq_f = (params["b_query"] @ w_in_q + b_in_q) * scale           # (1, E)
    wk_f = params["w_kv"][:, :E] @ w_in_k                          # (E, E)
    bk_f = params["b_kv"][:, :E] @ w_in_k + b_in_k                 # (1, E)
    wv_f = params["w_kv"][:, E:] @ w_in_v                          # (E, E)
    bv_f = params["b_kv"][:, E:] @ w_in_v + b_in_v                 # (1, E)
    wkv_f = jnp.concatenate([wk_f, wv_f], axis=-1)                 # (E, 2E): single k|v matmul
    bkv_f = jnp.concatenate([bk_f, bv_f], axis=-1)                 # (1, 2E)

    cdt = compute_dtype
    wq_c = wq_f.astype(cdt)
    wkv_c = wkv_f.astype(cdt)
    wo_c = params["w_out"].astype(cdt)
    bq_f = bq_f.astype(jnp.float32)          # biases stay f32 (added post f32 accumulation)
    bkv_f = bkv_f.astype(jnp.float32)
    bo_f = params["b_out"].astype(jnp.float32)

    q_in = x_query.reshape(B, L, Dq).astype(cdt)
    kv_in = x_key_value.reshape(B, S, E).astype(cdt)

    bt = _choose_batch_tile(B, max(L, S))
    grid = (B // bt,)

    # Advisory cost estimate for XLA's scheduler around the custom call.
    flops = 2 * B * (L * Dq * E + S * E * 2 * E + 2 * L * S * E + L * E * E)
    transcendentals = B * num_heads * L * (S + 1)                   # exp + approx reciprocal
    bytes_accessed = (q_in.size * q_in.dtype.itemsize
                      + kv_in.size * kv_in.dtype.itemsize
                      + wq_c.size * wq_c.dtype.itemsize
                      + wkv_c.size * wkv_c.dtype.itemsize
                      + wo_c.size * wo_c.dtype.itemsize
                      + (bq_f.size + bkv_f.size + bo_f.size) * 4
                      + B * L * E * x_query.dtype.itemsize)

    out = pl.pallas_call(
        functools.partial(_ica_kernel, num_heads=num_heads),
        out_shape=jax.ShapeDtypeStruct((B, L, E), x_query.dtype),
        grid_spec=pltpu.PrefetchScalarGridSpec(
            num_scalar_prefetch=0,
            grid=grid,
            in_specs=[
                pl.BlockSpec((bt, L, Dq), lambda b: (b, 0, 0)),
                pl.BlockSpec((bt, S, E), lambda b: (b, 0, 0)),
                pl.BlockSpec((Dq, E), lambda b: (0, 0)),
                pl.BlockSpec((1, E), lambda b: (0, 0)),
                pl.BlockSpec((E, 2 * E), lambda b: (0, 0)),
                pl.BlockSpec((1, 2 * E), lambda b: (0, 0)),
                pl.BlockSpec((E, E), lambda b: (0, 0)),
                pl.BlockSpec((1, E), lambda b: (0, 0)),
            ],
            out_specs=pl.BlockSpec((bt, L, E), lambda b: (b, 0, 0)),
        ),
        compiler_params=pltpu.CompilerParams(
            dimension_semantics=("parallel",)),
        cost_estimate=pl.CostEstimate(
            flops=flops,
            transcendentals=transcendentals,
            bytes_accessed=bytes_accessed),
    )(q_in, kv_in, wq_c, bq_f, wkv_c, bkv_f, wo_c, bo_f)

    # PyTorch: out (L,B,E) -> permute(1,0,2) -> (B,L,E) -> view(B, C_kv, H_kv, W_kv)
    return out.reshape(Bk, Ckv, Hk, Wk)


def _reference(x_query, x_key_value, params, num_heads):
    """Pure-JAX f32 reference mirroring the PyTorch forward (unfused)."""
    B, Cq, Hq, Wq = x_query.shape
    Bk, Ckv, Hk, Wk = x_key_value.shape
    Dq, E = Hq * Wq, Hk * Wk
    hd = E // num_heads
    q_in = x_query.reshape(B, Cq, Dq)
    kv_in = x_key_value.reshape(Bk, Ckv, E)
    q = q_in @ params["w_query"] + params["b_query"]                 # (B,L,E)
    kv = kv_in @ params["w_kv"] + params["b_kv"]                     # (B,S,2E)
    k, v = kv[..., :E], kv[..., E:]
    w_in, b_in = params["w_in"], params["b_in"]
    qp = q @ w_in[:, :E] + b_in[:, :E]
    kp = k @ w_in[:, E:2 * E] + b_in[:, E:2 * E]
    vp = v @ w_in[:, 2 * E:] + b_in[:, 2 * E:]

    def split(x):  # (B, T, E) -> (B, H, T, hd)
        Bx, T, _ = x.shape
        return x.reshape(Bx, T, num_heads, hd).transpose(0, 2, 1, 3)

    qh, kh, vh = split(qp), split(kp), split(vp)
    s = jnp.einsum("bhld,bhsd->bhls", qh, kh) / (hd ** 0.5)
    p = jax.nn.softmax(s, axis=-1)
    ctx = jnp.einsum("bhls,bhsd->bhld", p, vh)
    ctx = ctx.transpose(0, 2, 1, 3).reshape(B, Cq, E)
    out = ctx @ params["w_out"] + params["b_out"]
    return out.reshape(Bk, Ckv, Hk, Wk)


def _init_params(key, Dq, E):
    ks = jax.random.split(key, 10)
    sc = 0.05
    return {
        # all weights stored transposed relative to torch nn.Linear: (in, out)
        "w_query": jax.random.normal(ks[0], (Dq, E), jnp.float32) * sc,
        "b_query": jax.random.normal(ks[1], (1, E), jnp.float32) * sc,
        "w_kv": jax.random.normal(ks[2], (E, 2 * E), jnp.float32) * sc,
        "b_kv": jax.random.normal(ks[3], (1, 2 * E), jnp.float32) * sc,
        "w_in": jax.random.normal(ks[4], (E, 3 * E), jnp.float32) * sc,
        "b_in": jax.random.normal(ks[5], (1, 3 * E), jnp.float32) * sc,
        "w_out": jax.random.normal(ks[6], (E, E), jnp.float32) * sc,
        "b_out": jax.random.normal(ks[7], (1, E), jnp.float32) * sc,
    }


if __name__ == "__main__":
    # Shapes implied by the forward pass:
    #   in_channels_q  = Hq*Wq  = 64
    #   in_channels_kv = Hk*Wk  = 128  (MHA embed dim)
    #   attention seq lens = channel dims (Cq = Ckv = 8), batch B = 2, num_heads = 4
    B, C, Hq, Wq, Hk, Wk, num_heads = 2, 8, 8, 8, 8, 16, 4
    key = jax.random.PRNGKey(0)
    kx, kkv, kparam = jax.random.split(key, 3)
    x_query = jax.random.normal(kx, (B, C, Hq, Wq), jnp.float32)
    x_key_value = jax.random.normal(kkv, (B, C, Hk, Wk), jnp.float32)
    params = _init_params(kparam, Hq * Wq, Hk * Wk)

    out = inverted_cross_attention(x_query, x_key_value, params, num_heads)
    out = jax.block_until_ready(out)
    assert out.shape == (B, C, Hk, Wk), out.shape

    ref = _reference(x_query, x_key_value, params, num_heads)
    # bf16 matmul operands + approx reciprocal => loose-but-meaningful tolerance vs f32 ref
    max_err = float(jnp.max(jnp.abs(out - ref)))
    assert jnp.allclose(out, ref, rtol=3e-2, atol=3e-2), max_err

    print("KERNEL_OK")
</pallas_src>

<mosaic_0001>
module attributes {stable_mosaic.version = 11 : i64} {
  func.func @_ica_kernel(%arg0: i32, %arg1: memref<1x8x64xbf16, #tpu.memory_space<vmem>>, %arg2: memref<1x8x128xbf16, #tpu.memory_space<vmem>>, %arg3: memref<64x128xbf16, #tpu.memory_space<vmem>>, %arg4: memref<1x128xf32, #tpu.memory_space<vmem>>, %arg5: memref<128x256xbf16, #tpu.memory_space<vmem>>, %arg6: memref<1x256xf32, #tpu.memory_space<vmem>>, %arg7: memref<128x128xbf16, #tpu.memory_space<vmem>>, %arg8: memref<1x128xf32, #tpu.memory_space<vmem>>, %arg9: memref<1x8x128xf32, #tpu.memory_space<vmem>>) attributes {dimension_semantics = [#tpu.dimension_semantics<parallel>], iteration_bounds = array<i64: 2>, scalar_prefetch = 0 : i64, scratch_operands = 0 : i64, tpu.core_type = #tpu.core_type<tc>, window_params = [{transform_indices = @transform_0, window_bounds = array<i64: 1, 8, 64>}, {transform_indices = @transform_1, window_bounds = array<i64: 1, 8, 128>}, {pipeline_mode = #tpu.pipeline_mode<synchronous>, transform_indices = @transform_2, window_bounds = array<i64: 64, 128>}, {pipeline_mode = #tpu.pipeline_mode<synchronous>, transform_indices = @transform_3, window_bounds = array<i64: 1, 128>}, {pipeline_mode = #tpu.pipeline_mode<synchronous>, transform_indices = @transform_4, window_bounds = array<i64: 128, 256>}, {pipeline_mode = #tpu.pipeline_mode<synchronous>, transform_indices = @transform_5, window_bounds = array<i64: 1, 256>}, {pipeline_mode = #tpu.pipeline_mode<synchronous>, transform_indices = @transform_6, window_bounds = array<i64: 128, 128>}, {pipeline_mode = #tpu.pipeline_mode<synchronous>, transform_indices = @transform_7, window_bounds = array<i64: 1, 128>}, {transform_indices = @transform_8, window_bounds = array<i64: 1, 8, 128>}]} {
    %c0 = arith.constant 0 : index
    %c0_0 = arith.constant 0 : index
    %c0_1 = arith.constant 0 : index
    %0 = vector.load %arg1[%c0, %c0_0, %c0_1] : memref<1x8x64xbf16, #tpu.memory_space<vmem>>, vector<1x8x64xbf16>
    %1 = vector.shape_cast %0 : vector<1x8x64xbf16> to vector<8x64xbf16>
    %c0_2 = arith.constant 0 : index
    %c0_3 = arith.constant 0 : index
    %c0_4 = arith.constant 0 : index
    %2 = vector.load %arg2[%c0_2, %c0_3, %c0_4] : memref<1x8x128xbf16, #tpu.memory_space<vmem>>, vector<1x8x128xbf16>
    %3 = vector.shape_cast %2 : vector<1x8x128xbf16> to vector<8x128xbf16>
    %c0_5 = arith.constant 0 : index
    %c0_6 = arith.constant 0 : index
    %4 = vector.load %arg3[%c0_5, %c0_6] : memref<64x128xbf16, #tpu.memory_space<vmem>>, vector<64x128xbf16>
    %cst = arith.constant dense<0.000000e+00> : vector<8x128xf32>
    %5 = tpu.matmul %1, %4, %cst {dimension_numbers = #tpu.dot_dimension_numbers<[1], [0], [0], [1], [0, 0, 1, 1], [], []>} : vector<8x64xbf16>, vector<64x128xbf16>, vector<8x128xf32> -> vector<8x128xf32>
    %c0_7 = arith.constant 0 : index
    %c0_8 = arith.constant 0 : index
    %6 = vector.load %arg4[%c0_7, %c0_8] : memref<1x128xf32, #tpu.memory_space<vmem>>, vector<1x128xf32>
    %7 = vector.broadcast %6 : vector<1x128xf32> to vector<8x128xf32>
    %8 = arith.addf %5, %7 : vector<8x128xf32>
    %c0_9 = arith.constant 0 : index
    %c0_10 = arith.constant 0 : index
    %9 = vector.load %arg5[%c0_9, %c0_10] : memref<128x256xbf16, #tpu.memory_space<vmem>>, vector<128x256xbf16>
    %cst_11 = arith.constant dense<0.000000e+00> : vector<8x256xf32>
    %10 = tpu.matmul %3, %9, %cst_11 {dimension_numbers = #tpu.dot_dimension_numbers<[1], [0], [0], [1], [0, 0, 1, 1], [], []>} : vector<8x128xbf16>, vector<128x256xbf16>, vector<8x256xf32> -> vector<8x256xf32>
    %c0_12 = arith.constant 0 : index
    %c0_13 = arith.constant 0 : index
    %11 = vector.load %arg6[%c0_12, %c0_13] : memref<1x256xf32, #tpu.memory_space<vmem>>, vector<1x256xf32>
    %12 = vector.broadcast %11 : vector<1x256xf32> to vector<8x256xf32>
    %13 = arith.addf %10, %12 : vector<8x256xf32>
    %14 = vector.extract_strided_slice %13 {offsets = [0, 0], sizes = [8, 128], strides = [1, 1]} : vector<8x256xf32> to vector<8x128xf32>
    %15 = vector.extract_strided_slice %13 {offsets = [0, 128], sizes = [8, 128], strides = [1, 1]} : vector<8x256xf32> to vector<8x128xf32>
    %c0_14 = arith.constant 0 : index
    %c0_15 = arith.constant 0 : index
    %16 = vector.load %arg7[%c0_14, %c0_15] : memref<128x128xbf16, #tpu.memory_space<vmem>>, vector<128x128xbf16>
    %c0_16 = arith.constant 0 : index
    %c0_17 = arith.constant 0 : index
    %17 = vector.load %arg8[%c0_16, %c0_17] : memref<1x128xf32, #tpu.memory_space<vmem>>, vector<1x128xf32>
    %18 = vector.shape_cast %17 : vector<1x128xf32> to vector<1x128xf32>
    %19 = vector.broadcast %18 : vector<1x128xf32> to vector<8x128xf32>
    %20 = vector.extract_strided_slice %8 {offsets = [0, 0], sizes = [8, 32], strides = [1, 1]} : vector<8x128xf32> to vector<8x32xf32>
    %21 = arith.truncf %20 : vector<8x32xf32> to vector<8x32xbf16>
    %22 = vector.extract_strided_slice %14 {offsets = [0, 0], sizes = [8, 32], strides = [1, 1]} : vector<8x128xf32> to vector<8x32xf32>
    %23 = arith.truncf %22 : vector<8x32xf32> to vector<8x32xbf16>
    %24 = vector.extract_strided_slice %15 {offsets = [0, 0], sizes = [8, 32], strides = [1, 1]} : vector<8x128xf32> to vector<8x32xf32>
    %25 = arith.truncf %24 : vector<8x32xf32> to vector<8x32xbf16>
    %cst_18 = arith.constant dense<0.000000e+00> : vector<8x8xf32>
    %26 = tpu.matmul %21, %23, %cst_18 {dimension_numbers = #tpu.dot_dimension_numbers<[1], [1], [0], [0], [0, 0, 1, 0], [], []>} : vector<8x32xbf16>, vector<8x32xbf16>, vector<8x8xf32> -> vector<8x8xf32>
    %cst_19 = arith.constant dense<0xFF800000> : vector<8xf32>
    %27 = vector.multi_reduction <maximumf>, %26, %cst_19 [1] : vector<8x8xf32> to vector<8xf32>
    %28 = vector.shape_cast %27 : vector<8xf32> to vector<8x1xf32>
    %29 = vector.broadcast %28 : vector<8x1xf32> to vector<8x8xf32>
    %30 = arith.subf %26, %29 : vector<8x8xf32>
    %31 = math.exp %30 : vector<8x8xf32>
    %cst_20 = arith.constant dense<0.000000e+00> : vector<8xf32>
    %32 = vector.multi_reduction <add>, %31, %cst_20 [1] : vector<8x8xf32> to vector<8xf32>
    %33 = vector.shape_cast %32 : vector<8xf32> to vector<8x1xf32>
    %34 = tpu.reciprocal %33 {approx = true} : vector<8x1xf32> -> vector<8x1xf32>
    %35 = vector.broadcast %34 : vector<8x1xf32> to vector<8x8xf32>
    %36 = arith.mulf %31, %35 : vector<8x8xf32>
    %37 = arith.truncf %36 : vector<8x8xf32> to vector<8x8xbf16>
    %cst_21 = arith.constant dense<0.000000e+00> : vector<8x32xf32>
    %38 = tpu.matmul %37, %25, %cst_21 {dimension_numbers = #tpu.dot_dimension_numbers<[1], [0], [0], [1], [0, 0, 1, 1], [], []>} : vector<8x8xbf16>, vector<8x32xbf16>, vector<8x32xf32> -> vector<8x32xf32>
    %39 = arith.truncf %38 : vector<8x32xf32> to vector<8x32xbf16>
    %40 = vector.extract_strided_slice %16 {offsets = [0, 0], sizes = [32, 128], strides = [1, 1]} : vector<128x128xbf16> to vector<32x128xbf16>
    %cst_22 = arith.constant dense<0.000000e+00> : vector<8x128xf32>
    %41 = tpu.matmul %39, %40, %cst_22 {dimension_numbers = #tpu.dot_dimension_numbers<[1], [0], [0], [1], [0, 0, 1, 1], [], []>} : vector<8x32xbf16>, vector<32x128xbf16>, vector<8x128xf32> -> vector<8x128xf32>
    %42 = arith.addf %19, %41 : vector<8x128xf32>
    %43 = vector.extract_strided_slice %8 {offsets = [0, 32], sizes = [8, 32], strides = [1, 1]} : vector<8x128xf32> to vector<8x32xf32>
    %44 = arith.truncf %43 : vector<8x32xf32> to vector<8x32xbf16>
    %45 = vector.extract_strided_slice %14 {offsets = [0, 32], sizes = [8, 32], strides = [1, 1]} : vector<8x128xf32> to vector<8x32xf32>
    %46 = arith.truncf %45 : vector<8x32xf32> to vector<8x32xbf16>
    %47 = vector.extract_strided_slice %15 {offsets = [0, 32], sizes = [8, 32], strides = [1, 1]} : vector<8x128xf32> to vector<8x32xf32>
    %48 = arith.truncf %47 : vector<8x32xf32> to vector<8x32xbf16>
    %cst_23 = arith.constant dense<0.000000e+00> : vector<8x8xf32>
    %49 = tpu.matmul %44, %46, %cst_23 {dimension_numbers = #tpu.dot_dimension_numbers<[1], [1], [0], [0], [0, 0, 1, 0], [], []>} : vector<8x32xbf16>, vector<8x32xbf16>, vector<8x8xf32> -> vector<8x8xf32>
    %cst_24 = arith.constant dense<0xFF800000> : vector<8xf32>
    %50 = vector.multi_reduction <maximumf>, %49, %cst_24 [1] : vector<8x8xf32> to vector<8xf32>
    %51 = vector.shape_cast %50 : vector<8xf32> to vector<8x1xf32>
    %52 = vector.broadcast %51 : vector<8x1xf32> to vector<8x8xf32>
    %53 = arith.subf %49, %52 : vector<8x8xf32>
    %54 = math.exp %53 : vector<8x8xf32>
    %cst_25 = arith.constant dense<0.000000e+00> : vector<8xf32>
    %55 = vector.multi_reduction <add>, %54, %cst_25 [1] : vector<8x8xf32> to vector<8xf32>
    %56 = vector.shape_cast %55 : vector<8xf32> to vector<8x1xf32>
    %57 = tpu.reciprocal %56 {approx = true} : vector<8x1xf32> -> vector<8x1xf32>
    %58 = vector.broadcast %57 : vector<8x1xf32> to vector<8x8xf32>
    %59 = arith.mulf %54, %58 : vector<8x8xf32>
    %60 = arith.truncf %59 : vector<8x8xf32> to vector<8x8xbf16>
    %cst_26 = arith.constant dense<0.000000e+00> : vector<8x32xf32>
    %61 = tpu.matmul %60, %48, %cst_26 {dimension_numbers = #tpu.dot_dimension_numbers<[1], [0], [0], [1], [0, 0, 1, 1], [], []>} : vector<8x8xbf16>, vector<8x32xbf16>, vector<8x32xf32> -> vector<8x32xf32>
    %62 = arith.truncf %61 : vector<8x32xf32> to vector<8x32xbf16>
    %63 = vector.extract_strided_slice %16 {offsets = [32, 0], sizes = [32, 128], strides = [1, 1]} : vector<128x128xbf16> to vector<32x128xbf16>
    %cst_27 = arith.constant dense<0.000000e+00> : vector<8x128xf32>
    %64 = tpu.matmul %62, %63, %cst_27 {dimension_numbers = #tpu.dot_dimension_numbers<[1], [0], [0], [1], [0, 0, 1, 1], [], []>} : vector<8x32xbf16>, vector<32x128xbf16>, vector<8x128xf32> -> vector<8x128xf32>
    %65 = arith.addf %42, %64 : vector<8x128xf32>
    %66 = vector.extract_strided_slice %8 {offsets = [0, 64], sizes = [8, 32], strides = [1, 1]} : vector<8x128xf32> to vector<8x32xf32>
    %67 = arith.truncf %66 : vector<8x32xf32> to vector<8x32xbf16>
    %68 = vector.extract_strided_slice %14 {offsets = [0, 64], sizes = [8, 32], strides = [1, 1]} : vector<8x128xf32> to vector<8x32xf32>
    %69 = arith.truncf %68 : vector<8x32xf32> to vector<8x32xbf16>
    %70 = vector.extract_strided_slice %15 {offsets = [0, 64], sizes = [8, 32], strides = [1, 1]} : vector<8x128xf32> to vector<8x32xf32>
    %71 = arith.truncf %70 : vector<8x32xf32> to vector<8x32xbf16>
    %cst_28 = arith.constant dense<0.000000e+00> : vector<8x8xf32>
    %72 = tpu.matmul %67, %69, %cst_28 {dimension_numbers = #tpu.dot_dimension_numbers<[1], [1], [0], [0], [0, 0, 1, 0], [], []>} : vector<8x32xbf16>, vector<8x32xbf16>, vector<8x8xf32> -> vector<8x8xf32>
    %cst_29 = arith.constant dense<0xFF800000> : vector<8xf32>
    %73 = vector.multi_reduction <maximumf>, %72, %cst_29 [1] : vector<8x8xf32> to vector<8xf32>
    %74 = vector.shape_cast %73 : vector<8xf32> to vector<8x1xf32>
    %75 = vector.broadcast %74 : vector<8x1xf32> to vector<8x8xf32>
    %76 = arith.subf %72, %75 : vector<8x8xf32>
    %77 = math.exp %76 : vector<8x8xf32>
    %cst_30 = arith.constant dense<0.000000e+00> : vector<8xf32>
    %78 = vector.multi_reduction <add>, %77, %cst_30 [1] : vector<8x8xf32> to vector<8xf32>
    %79 = vector.shape_cast %78 : vector<8xf32> to vector<8x1xf32>
    %80 = tpu.reciprocal %79 {approx = true} : vector<8x1xf32> -> vector<8x1xf32>
    %81 = vector.broadcast %80 : vector<8x1xf32> to vector<8x8xf32>
    %82 = arith.mulf %77, %81 : vector<8x8xf32>
    %83 = arith.truncf %82 : vector<8x8xf32> to vector<8x8xbf16>
    %cst_31 = arith.constant dense<0.000000e+00> : vector<8x32xf32>
    %84 = tpu.matmul %83, %71, %cst_31 {dimension_numbers = #tpu.dot_dimension_numbers<[1], [0], [0], [1], [0, 0, 1, 1], [], []>} : vector<8x8xbf16>, vector<8x32xbf16>, vector<8x32xf32> -> vector<8x32xf32>
    %85 = arith.truncf %84 : vector<8x32xf32> to vector<8x32xbf16>
    %86 = vector.extract_strided_slice %16 {offsets = [64, 0], sizes = [32, 128], strides = [1, 1]} : vector<128x128xbf16> to vector<32x128xbf16>
    %cst_32 = arith.constant dense<0.000000e+00> : vector<8x128xf32>
    %87 = tpu.matmul %85, %86, %cst_32 {dimension_numbers = #tpu.dot_dimension_numbers<[1], [0], [0], [1], [0, 0, 1, 1], [], []>} : vector<8x32xbf16>, vector<32x128xbf16>, vector<8x128xf32> -> vector<8x128xf32>
    %88 = arith.addf %65, %87 : vector<8x128xf32>
    %89 = vector.extract_strided_slice %8 {offsets = [0, 96], sizes = [8, 32], strides = [1, 1]} : vector<8x128xf32> to vector<8x32xf32>
    %90 = arith.truncf %89 : vector<8x32xf32> to vector<8x32xbf16>
    %91 = vector.extract_strided_slice %14 {offsets = [0, 96], sizes = [8, 32], strides = [1, 1]} : vector<8x128xf32> to vector<8x32xf32>
    %92 = arith.truncf %91 : vector<8x32xf32> to vector<8x32xbf16>
    %93 = vector.extract_strided_slice %15 {offsets = [0, 96], sizes = [8, 32], strides = [1, 1]} : vector<8x128xf32> to vector<8x32xf32>
    %94 = arith.truncf %93 : vector<8x32xf32> to vector<8x32xbf16>
    %cst_33 = arith.constant dense<0.000000e+00> : vector<8x8xf32>
    %95 = tpu.matmul %90, %92, %cst_33 {dimension_numbers = #tpu.dot_dimension_numbers<[1], [1], [0], [0], [0, 0, 1, 0], [], []>} : vector<8x32xbf16>, vector<8x32xbf16>, vector<8x8xf32> -> vector<8x8xf32>
    %cst_34 = arith.constant dense<0xFF800000> : vector<8xf32>
    %96 = vector.multi_reduction <maximumf>, %95, %cst_34 [1] : vector<8x8xf32> to vector<8xf32>
    %97 = vector.shape_cast %96 : vector<8xf32> to vector<8x1xf32>
    %98 = vector.broadcast %97 : vector<8x1xf32> to vector<8x8xf32>
    %99 = arith.subf %95, %98 : vector<8x8xf32>
    %100 = math.exp %99 : vector<8x8xf32>
    %cst_35 = arith.constant dense<0.000000e+00> : vector<8xf32>
    %101 = vector.multi_reduction <add>, %100, %cst_35 [1] : vector<8x8xf32> to vector<8xf32>
    %102 = vector.shape_cast %101 : vector<8xf32> to vector<8x1xf32>
    %103 = tpu.reciprocal %102 {approx = true} : vector<8x1xf32> -> vector<8x1xf32>
    %104 = vector.broadcast %103 : vector<8x1xf32> to vector<8x8xf32>
    %105 = arith.mulf %100, %104 : vector<8x8xf32>
    %106 = arith.truncf %105 : vector<8x8xf32> to vector<8x8xbf16>
    %cst_36 = arith.constant dense<0.000000e+00> : vector<8x32xf32>
    %107 = tpu.matmul %106, %94, %cst_36 {dimension_numbers = #tpu.dot_dimension_numbers<[1], [0], [0], [1], [0, 0, 1, 1], [], []>} : vector<8x8xbf16>, vector<8x32xbf16>, vector<8x32xf32> -> vector<8x32xf32>
    %108 = arith.truncf %107 : vector<8x32xf32> to vector<8x32xbf16>
    %109 = vector.extract_strided_slice %16 {offsets = [96, 0], sizes = [32, 128], strides = [1, 1]} : vector<128x128xbf16> to vector<32x128xbf16>
    %cst_37 = arith.constant dense<0.000000e+00> : vector<8x128xf32>
    %110 = tpu.matmul %108, %109, %cst_37 {dimension_numbers = #tpu.dot_dimension_numbers<[1], [0], [0], [1], [0, 0, 1, 1], [], []>} : vector<8x32xbf16>, vector<32x128xbf16>, vector<8x128xf32> -> vector<8x128xf32>
    %111 = arith.addf %88, %110 : vector<8x128xf32>
    %c0_38 = arith.constant 0 : index
    %c0_39 = arith.constant 0 : index
    %c0_40 = arith.constant 0 : index
    %112 = vector.load %arg9[%c0_38, %c0_39, %c0_40] : memref<1x8x128xf32, #tpu.memory_space<vmem>>, vector<1x8x128xf32>
    %113 = vector.shape_cast %112 : vector<1x8x128xf32> to vector<8x128xf32>
    %114 = vector.shape_cast %111 : vector<8x128xf32> to vector<1x8x128xf32>
    tpu.vector_store %arg9[%c0_38, %c0_39, %c0_40], %114 {strides = array<i32>} : memref<1x8x128xf32, #tpu.memory_space<vmem>>, vector<1x8x128xf32>,
    return
  }
  func.func @transform_0(%arg0: i32) -> (i32, i32, i32) {
    %c0_i32 = arith.constant 0 : i32
    %c0_i32_0 = arith.constant 0 : i32
    %c0_i32_1 = arith.constant 0 : i32
    return %arg0, %c0_i32, %c0_i32_0 : i32, i32, i32
  }
  func.func @transform_1(%arg0: i32) -> (i32, i32, i32) {
    %c0_i32 = arith.constant 0 : i32
    %c0_i32_0 = arith.constant 0 : i32
    %c0_i32_1 = arith.constant 0 : i32
    return %arg0, %c0_i32, %c0_i32_0 : i32, i32, i32
  }
  func.func @transform_2(%arg0: i32) -> (i32, i32) {
    %c0_i32 = arith.constant 0 : i32
    %c0_i32_0 = arith.constant 0 : i32
    %c0_i32_1 = arith.constant 0 : i32
    return %c0_i32, %c0_i32_0 : i32, i32
  }
  func.func @transform_3(%arg0: i32) -> (i32, i32) {
    %c0_i32 = arith.constant 0 : i32
    %c0_i32_0 = arith.constant 0 : i32
    %c0_i32_1 = arith.constant 0 : i32
    return %c0_i32, %c0_i32_0 : i32, i32
  }
  func.func @transform_4(%arg0: i32) -> (i32, i32) {
    %c0_i32 = arith.constant 0 : i32
    %c0_i32_0 = arith.constant 0 : i32
    %c0_i32_1 = arith.constant 0 : i32
    return %c0_i32, %c0_i32_0 : i32, i32
  }
  func.func @transform_5(%arg0: i32) -> (i32, i32) {
    %c0_i32 = arith.constant 0 : i32
    %c0_i32_0 = arith.constant 0 : i32
    %c0_i32_1 = arith.constant 0 : i32
    return %c0_i32, %c0_i32_0 : i32, i32
  }
  func.func @transform_6(%arg0: i32) -> (i32, i32) {
    %c0_i32 = arith.constant 0 : i32
    %c0_i32_0 = arith.constant 0 : i32
    %c0_i32_1 = arith.constant 0 : i32
    return %c0_i32, %c0_i32_0 : i32, i32
  }
  func.func @transform_7(%arg0: i32) -> (i32, i32) {
    %c0_i32 = arith.constant 0 : i32
    %c0_i32_0 = arith.constant 0 : i32
    %c0_i32_1 = arith.constant 0 : i32
    return %c0_i32, %c0_i32_0 : i32, i32
  }
  func.func @transform_8(%arg0: i32) -> (i32, i32, i32) {
    %c0_i32 = arith.constant 0 : i32
    %c0_i32_0 = arith.constant 0 : i32
    %c0_i32_1 = arith.constant 0 : i32
    return %arg0, %c0_i32, %c0_i32_0 : i32, i32, i32
  }
}

</mosaic_0001>

<bundles_post_ra>
// kernel: tpu_custom_call.1
= control target key start
LH: loop header
LB: loop body
LE: loop exit
PB: predicated region body
PF: predicated region fallthrough
CT: control target
= control target key end

     0   :  { %s2420_s0 = inlined_call_operand.hbm [shape: bf16[2,8,64], index: 0, kind: input, shape index: {}]   ;;  %s2421_s1 = inlined_call_operand.hbm [shape: bf16[2,8,128], index: 1, kind: input, shape index: {}]   ;;  %s2422_s2 = inlined_call_operand.hbm [shape: bf16[64,128], index: 2, kind: input, shape index: {}]   ;;  %s2423_s3 = inlined_call_operand.vmem [shape: f32[1,128], index: 3, kind: input, shape index: {}]   ;;  %s2424_s4 = inlined_call_operand.hbm [shape: bf16[128,256], index: 4, kind: input, shape index: {}]   ;;  %s2425_s5 = inlined_call_operand.vmem [shape: f32[1,256], index: 5, kind: input, shape index: {}]   ;;  %s2426_s6 = inlined_call_operand.hbm [shape: bf16[128,128], index: 6, kind: input, shape index: {}]   ;;  %s2427_s7 = inlined_call_operand.vmem [shape: f32[1,128], index: 7, kind: input, shape index: {}]   ;;  %s2428_s8 = inlined_call_operand.hbm [shape: f32[2,8,128], index: 8, kind: output, shape index: {}]  }
   0x1   :  { %2434 = sst [smem:[#allocation19_spill]] %s2422_s2 }
   0x2   :  { %2435 = sst [smem:[#allocation20_spill]] %s2424_s4 }
   0x3   :  { %2436 = sst [smem:[#allocation21_spill]] %s2426_s6 }
   0x4   :  { %13 = vsyncpa [#allocation3], 0 }
   0x5   :  { %15 = vsyncpa [#allocation3 + $0x1], 0 }
   0x6   :  { %16 = vsyncpa [#allocation6], 0 }
   0x7   :  { %18 = vsyncpa [#allocation6 + $0x1], 0 }
   0x8   :  { %19 = vsyncpa [#allocation9], 0 }
   0x9   :  { %20 = vsyncpa [#allocation4], 0 }
   0xa   :  { %22 = vsyncpa [#allocation4 + $0x1], 0  ;;  %s2072_s27 = smov 0   ;;  %s2074_s28 = smov 0  }
   0xb   :  { %s2076_s29 = smov 0   ;;  %s2078_s30 = smov 0  }
   0xc LB: > { %2437 = sst [smem:[#allocation17_spill]] %s2005_s29  ;;  %s2093_s9 = sadd.s32 4294967295, %s2009_s30   ;;  %s2009_s30 = sphi %s2078_s30, %s2461_s30   ;;  %s2005_s29 = sphi %s2076_s29, %s2458_s29   ;;  %s2001_s28 = sphi %s2074_s28, %s2460_s28   ;;  %s1997_s27 = sphi %s2072_s27, %s2459_s27  }
   0xd   : > { %s1466_s10 = sadd.s32 4294967294, %s2009_s30   ;;  %p48_p0 = scmp.ne.s32.totalorder %s2001_s28, %s1997_s27 }
   0xe   : > { %p2430_p1 = scmp.eq.s32.totalorder %s2093_s9, 0  ;;  %p224_p2 = scmp.eq.s32.totalorder %s2093_s9, 1 }
   0xf   : > { %p230_p3 = scmp.eq.s32.totalorder %s1466_s10, 1  ;;  %p1467_p5 = scmp.ge.s32.totalorder %s2009_s30, 1 }
  0x10   : > { %p2102_p4 = por %p2430_p1, %p48_p0  ;;  %p237_p7 = scmp.lt.s32.totalorder %s2009_s30, 3 }
  0x11   : > { %p2107_p6 = por %p230_p3, %p48_p0  ;;  %s2011_s14 = smov [#allocation7]  }
  0x12   : > { %s2438_s11 = scalar_select %p2102_p4, 1, 0 }
  0x13   : > { %s2439_s12 = scalar_select %p2107_p6, 1, 0 }
  0x14   : > { %p2112_p8 = pnand %p1467_p5, %p237_p7  ;;  %s249_s15 = sshll.u32 %s2011_s14, 4  ;;  %s250_s15 = int_to_ptr.vmem [resolvable:$true] %s249_s15 }
  0x15   : > { %s2012_s17 = smov [#allocation8]   ;;  %s1810_s19 = scalar_lea.vmem %s250_s15, 512 }
  0x16   : > { %s2440_s13 = scalar_select %p2112_p8, 1, 0 }
  0x17   : > { %p1673_p9 = pneg %p2112_p8  ;;  %s265_s18 = sshll.u32 %s2012_s17, 4  ;;  %s266_s18 = int_to_ptr.vmem [resolvable:$true] %s265_s18 }
  0x18   : > { %p1811_p13 = scmp.ne.s32.totalorder %s250_s15, %s1810_s19  ;;  %p1818_p5 = scmp.lt.s32.totalorder %s250_s15, %s250_s15 }
  0x19   : > { %p2121_p11 = pnand %p1673_p9, %p2430_p1  ;;  %p1819_p7 = scmp.lt.s32.totalorder %s1810_s19, %s1810_s19 }
  0x1b   : > { %p1801_p12 = pneg %p2121_p11  ;;  %p1820_p10 = por %p1819_p7, %p1818_p5 }
  0x1d   : > { %p1813_p0 = pnand %p1811_p13, %p1801_p12 }
  0x1f   : > { %p1814_p3 = pneg %p1813_p0 }
  0x21   : > { %p1821_p9 = pnand %p1820_p10, %p1814_p3 }
  0x23   : > { %1824 = shalt.err (!%p1821_p9)
}
  0x24   : > { %s2013_s20 = smov 64   ;;  %s2014_s21 = smov 4  }
  0x25   : > { %s2442_s2 = sld [smem:[#allocation19_spill]]  ;;  %s1836_s24 = scalar_lea.vmem %s266_s18, 2048 }
  0x26   : > { %p1837_p13 = scmp.ne.s32.totalorder %s266_s18, %s1836_s24  ;;  %p1844_p10 = scmp.lt.s32.totalorder %s266_s18, %s266_s18 }
  0x27   : > { %p1845_p3 = scmp.lt.s32.totalorder %s1836_s24, %s1836_s24 }
  0x28   : > { %p1839_p0 = pnand %p1837_p13, %p1801_p12 }
  0x29   : > { %p1846_p7 = por %p1845_p3, %p1844_p10 }
  0x2a   : > { %p1840_p5 = pneg %p1839_p0 }
  0x2b   : > { %1676 = dma.hbm_to_vmem [thread:$0]  (!%p2121_p11), %s2442_s2, 512, %s250_s15, [#allocation6], %s2013_s20, %s2013_s20, %s2014_s21  }
  0x2c   : > { %p1847_p9 = pnand %p1846_p7, %p1840_p5 }
  0x2e   : > { %1850 = shalt.err (!%p1847_p9)
}
  0x2f   : > { %s2015_s25 = smov 128   ;;  %s2016_s26 = smov 8  }
  0x30   : > { %s2443_s4 = sld [smem:[#allocation20_spill]]  ;;  %s2017_s15 = smov [#allocation10]  }
  0x31   : > { %s281_s17 = sshll.u32 %s2017_s15, 4  ;;  %s2147_s19 = sadd.s32 1, %s2009_s30   ;;  %s282_s17 = int_to_ptr.vmem [resolvable:$true] %s281_s17 }
  0x32   : > { %s1862_s22 = scalar_lea.vmem %s282_s17, 1024  ;;  %p1870_p10 = scmp.lt.s32.totalorder %s282_s17, %s282_s17 }
  0x33   : > { %p1863_p13 = scmp.ne.s32.totalorder %s282_s17, %s1862_s22  ;;  %p1871_p3 = scmp.lt.s32.totalorder %s1862_s22, %s1862_s22 }
  0x35   : > { %p1865_p0 = pnand %p1863_p13, %p1801_p12  ;;  %p1872_p7 = por %p1871_p3, %p1870_p10 }
  0x36   : > { %1679 = dma.hbm_to_vmem [thread:$0]  (!%p2121_p11), %s2443_s4, 2048, %s266_s18, [#allocation9], %s2015_s25, %s2015_s25, %s2016_s26  }
  0x37   : > { %p1866_p5 = pneg %p1865_p0 }
  0x39   : > { %p1873_p9 = pnand %p1872_p7, %p1866_p5 }
  0x3b   : > { %1876 = shalt.err (!%p1873_p9)
}
  0x3c   : > { %s2444_s6 = sld [smem:[#allocation21_spill]]  ;;  %s32_s24 = ssub.s32 %s2009_s30, %s2147_s19 }
  0x3d   : > { %s35_s16 = sadd.s32 1, %s2005_s29  ;;  %p33_p12 = scmp.eq.s32.totalorder %s32_s24, 0 }
  0x3e   : > { %p42_p13 = scmp.ne.s32.totalorder %s2005_s29, %s2001_s28  ;;  %p43_p0 = scmp.eq.s32.totalorder %s2009_s30, 0 }
  0x3f   : > { %p1697_p5 = scmp.lt.s32.totalorder %s2009_s30, 2  ;;  %s298_s10 = sand.u32 1, %s2005_s29  }
  0x40   : > { %s2168_s25 = scalar_select %p33_p12, %s2005_s29, %s35_s16  }
  0x41   : > { %p44_p10 = por %p43_p0, %p42_p13  ;;  %p2172_p3 = por %p224_p2, %p42_p13 }
  0x42   : > { %1682 = dma.hbm_to_vmem [thread:$0]  (!%p2121_p11), %s2444_s6, 1024, %s282_s17, [#allocation9], %s2013_s20, %s2013_s20, %s2014_s21  }
  0x43   : > { %2445 = sst [smem:[#allocation18_spill]] %s2168_s25  ;;  %s1473_s14 = sshll.u32 %s2009_s30, 6 }
  0x44   : > { %s2446_s26 = scalar_select %p2172_p3, 1, 0 }
  0x45   : > { %s2178_s15 = sshll.u32 %s298_s10, 2  ;;  %s2183_s21 = scalar_lea.hbm %s2420_s0, %s1473_s14 }
  0x46   : > { %s302_s17 = scalar_lea.vmem [#allocation2], %s2178_s15  ;;  %p2186_p11 = pnand %p1697_p5, %p44_p10 }
  0x47   : > { %s309_s18 = sshll.u32 %s302_s17, 4  ;;  %s2193_s2 = scalar_lea.hbm %s2421_s1, %s1473_s14  ;;  %s310_s18 = int_to_ptr.vmem [resolvable:$true] %s309_s18 }
  0x48   : > { %s299_s22 = scalar_lea.sflag [#allocation3], %s298_s10  ;;  %s1877_s20 = scalar_lea.hbm %s2183_s21, 64 }
  0x49   : > { %p1878_p2 = scmp.ne.s32.totalorder %s2183_s21, %s1877_s20  ;;  %p1879_p7 = pneg %p2186_p11 }
  0x4a   : > { %s1882_s6 = scalar_lea.hbm %s2420_s0, 128  ;;  %p1883_p13 = scmp.lt.s32.totalorder %s2183_s21, %s2420_s0 }
  0x4b   : > { %p1880_p9 = pnand %p1879_p7, %p1878_p2  ;;  %p1884_p0 = scmp.lt.s32.totalorder %s1882_s6, %s1877_s20 }
  0x4d   : > { %p1881_p12 = pneg %p1880_p9  ;;  %p1885_p5 = por %p1884_p0, %p1883_p13 }
  0x4f   : > { %p1886_p10 = pnand %p1885_p5, %p1881_p12 }
  0x51   : > { %1889 = shalt.err (!%p1886_p10)
}
  0x52   : > { %s1890_s10 = scalar_lea.vmem %s310_s18, 64  ;;  %s2018_s14 = smov [#allocation2]  }
  0x53   : > { %p1891_p1 = scmp.ne.s32.totalorder %s310_s18, %s1890_s10  ;;  %s1895_s24 = sshll.u32 %s2018_s14, 4  ;;  %s1896_s24 = int_to_ptr.vmem [resolvable:$false] %s1895_s24 }
  0x54   : > { %s1897_s4 = scalar_lea.vmem %s1896_s24, 128  ;;  %p1898_p9 = scmp.lt.s32.totalorder %s310_s18, %s1896_s24 }
  0x55   : > { %p1893_p6 = pnand %p1891_p1, %p1879_p7  ;;  %p1899_p3 = scmp.lt.s32.totalorder %s1897_s4, %s1890_s10 }
  0x57   : > { %p1894_p2 = pneg %p1893_p6  ;;  %p1900_p4 = por %p1899_p3, %p1898_p9 }
  0x59   : > { %p1901_p8 = pnand %p1900_p4, %p1894_p2 }
  0x5b   : > { %1904 = shalt.err (!%p1901_p8)
}
  0x5c   : > { %1686 = dma.hbm_to_vmem [thread:$0]  (!%p2186_p11), %s2183_s21, 64, %s310_s18, %s299_s22  }
  0x5d   : > { %s316_s6 = sand.u32 1, %s2009_s30   ;;  %s320_s29 = scalar_lea.vmem [#allocation5], %s2178_s15 }
  0x5e   : > { %s327_s25 = sshll.u32 %s320_s29, 4  ;;  %s317_s16 = scalar_lea.sflag [#allocation6], %s316_s6  ;;  %s328_s25 = int_to_ptr.vmem [resolvable:$true] %s327_s25 }
  0x5f   : > { %s1905_s20 = scalar_lea.hbm %s2193_s2, 64  ;;  %s1910_s14 = scalar_lea.hbm %s2421_s1, 128 }
  0x60   : > { %p1906_p1 = scmp.ne.s32.totalorder %s2193_s2, %s1905_s20  ;;  %p1911_p8 = scmp.lt.s32.totalorder %s2193_s2, %s2421_s1 }
  0x61   : > { %p1912_p3 = scmp.lt.s32.totalorder %s1910_s14, %s1905_s20 }
  0x62   : > { %p1908_p4 = pnand %p1906_p1, %p1879_p7 }
  0x63   : > { %p1913_p12 = por %p1912_p3, %p1911_p8 }
  0x64   : > { %p1909_p6 = pneg %p1908_p4 }
  0x66   : > { %p1914_p13 = pnand %p1913_p12, %p1909_p6 }
  0x68   : > { %1917 = shalt.err (!%p1914_p13)
}
  0x69   : > { %s1918_s15 = scalar_lea.vmem %s328_s25, 64  ;;  %s2019_s21 = smov [#allocation5]  }
  0x6a   : > { %p1919_p0 = scmp.ne.s32.totalorder %s328_s25, %s1918_s15  ;;  %s1923_s18 = sshll.u32 %s2019_s21, 4  ;;  %s1924_s18 = int_to_ptr.vmem [resolvable:$false] %s1923_s18 }
  0x6b   : > { %s1925_s22 = scalar_lea.vmem %s1924_s18, 128  ;;  %p1926_p2 = scmp.lt.s32.totalorder %s328_s25, %s1924_s18 }
  0x6c   : > { %p1921_p5 = pnand %p1919_p0, %p1879_p7  ;;  %p1927_p9 = scmp.lt.s32.totalorder %s1925_s22, %s1918_s15 }
  0x6e   : > { %p1922_p10 = pneg %p1921_p5  ;;  %p1928_p1 = por %p1927_p9, %p1926_p2 }
  0x70   : > { %p1929_p4 = pnand %p1928_p1, %p1922_p10 }
  0x72   : > { %1932 = shalt.err (!%p1929_p4)
}
  0x73   : > { %1689 = dma.hbm_to_vmem [thread:$0]  (!%p2186_p11), %s2193_s2, 64, %s328_s25, %s317_s16  }
  0x74   : > { %p2448_p6 = scmp.ne.s32.totalorder %s2440_s13, 0 }
  0x75   : > { %s2238_s6 = sand.u32 (!%p2448_p6), 1, %s2001_s28   ;;  %p2449_p7 = scmp.ne.s32.totalorder (!%p2448_p6), %s2438_s11, 0 }
  0x76   : > { %336 = sbr.rel (%p2448_p6) target bundleno = 2517 (0x9d5), region = 52  ;;  %s1477_s29 = sshll.u32 (!%p2448_p6), %s2238_s6, 2 }
  0x77   : > { %s339_s20 = scalar_lea.sflag (!%p2448_p6), [#allocation3], %s2238_s6  ;;  %s2242_s17 = scalar_lea.vmem (!%p2448_p6), [#allocation2], %s1477_s29 }
  0x7b   : > { %1976 = dma.done.wait (%p2449_p7), %s339_s20, 64  }
  0x7c   : > { %1978 = vsyncadd (%p2449_p7), %s339_s20, 4294967232  ;;  %s347_s2 = sand.u32 1, %s2093_s9   ;;  %s2249_s23 = scalar_lea.vmem [#allocation5], %s1477_s29 }
  0x7d   : > { %s348_s13 = scalar_lea.sflag [#allocation6], %s347_s2 }
  0x7e   : > { %1980 = dma.done.wait (%p2449_p7), %s348_s13, 64  }
  0x7f   : > { %1982 = vsyncadd (%p2449_p7), %s348_s13, 4294967232  ;;  %p2450_p11 = scmp.eq.s32.totalorder %s2093_s9, 0 }
  0x81   : > { %1984 = dma.done.wait (%p2450_p11), [#allocation6], 512   ;;  %p2451_p8 = pmov %p2450_p11 }
  0x83   : > { %1986 = vsyncadd (%p2451_p8), [#allocation6], 4294966784  ;;  %p2452_p3 = pmov %p2451_p8 }
  0x85   : > { %1988 = dma.done.wait (%p2452_p3), [#allocation9], 3072   ;;  %p2453_p12 = pmov %p2452_p3 }
  0x86   : > { %v2020_v0 = vmov 0.0   ;;  %v2021_v1 = vmov 0   ;;  %vm2022_vm0 = vmmov 0   ;;  %v1747_v2 = vld [vmem:[#allocation8 + $0x74] ss:$8 sps:$4 sm:$0xff]   ;;  %v1770_v13 = vld [vmem:[#allocation7 + $0x8] sm:$0xff]   ;;  %v505_v24 = vlaneseq }
  0x87   : > { %1990 = vsyncadd (%p2453_p12), [#allocation9], 4294964224  ;;  %1563 = vmatprep.subr.bf16.mxu0 %v2020_v0  ;;  %627 = vmatprep.mubr.bf16.mxu1 %v2021_v1  ;;  %v1749_v3 = vld [vmem:[#allocation8 + $0x70] ss:$8 sps:$4 sm:$0xff]   ;;  %v1750_v4 = vld [vmem:[#allocation8 + $0x64] ss:$8 sps:$4 sm:$0xff]  }
  0x88   : > { %1571 = vmatprep.mubr.msk.bf16.mxu0 %vm2022_vm0, %v2020_v0  ;;  %595 = vmatprep.subr.bf16.mxu1 %v1747_v2  ;;  %v1752_v5 = vld [vmem:[#allocation8 + $0x60] ss:$8 sps:$4 sm:$0xff]   ;;  %v1753_v6 = vld [vmem:[#allocation8 + $0x54] ss:$8 sps:$4 sm:$0xff]   ;;  %v1755_v7 = vld [vmem:[#allocation8 + $0x50] ss:$8 sps:$4 sm:$0xff]  }
  0x89   : > { %596 = vmatpush1.bf16.msra.mxu1 %v1749_v3  ;;  %v1762_v8 = vld [vmem:[#allocation7 + $0x18] sm:$0xff]   ;;  %v1756_v9 = vld [vmem:[#allocation8 + $0x44] ss:$8 sps:$4 sm:$0xff]   ;;  %v1766_v10 = vld [vmem:[#allocation7 + $0x10] sm:$0xff]   ;;  %vm443_vm1 = vcmask 523264   ;;  %v506_v25 = vshrl.u32 %v505_v24, 7 }
  0x8a   : > { %597 = vmatprep.subr.bf16.mxu1 %v1750_v4  ;;  %1564 = vmatpush3.bf16.msra.mxu0 %v1762_v8  ;;  %v1758_v11 = vld [vmem:[#allocation8 + $0x40] ss:$8 sps:$4 sm:$0xff]   ;;  %v1759_v12 = vld [vmem:[#allocation8 + $0x34] ss:$8 sps:$4 sm:$0xff]   ;;  %v1761_v14 = vld [vmem:[#allocation8 + $0x30] ss:$8 sps:$4 sm:$0xff]  }
  0x8b   : > { %1565 = vmatprep.subr.bf16.mxu0 %v2020_v0  ;;  %v1763_v15 = vld [vmem:[#allocation8 + $0x24] ss:$8 sps:$4 sm:$0xff]   ;;  %v1765_v17 = vld [vmem:[#allocation8 + $0x20] ss:$8 sps:$4 sm:$0xff]   ;;  %v1767_v18 = vld [vmem:[#allocation8 + $0x14] ss:$8 sps:$4 sm:$0xff]  }
  0x8c   : > { %v1774_v16 = vld [vmem:[#allocation7] sm:$0xff]   ;;  %v402_v19 = vld [vmem:[%s2242_s17] sm:$0xf]  ;;  %v403_v23 = vld [vmem:[%s2249_s23] sm:$0xf]  ;;  %v507_v28 = vsub.s32 0, %v506_v25 }
  0x8d   : > { %598 = vmatpush1.bf16.msra.mxu1 %v1752_v5  ;;  %v1769_v20 = vld [vmem:[#allocation8 + $0x10] ss:$8 sps:$4 sm:$0xff]   ;;  %v1771_v21 = vld [vmem:[#allocation8 + $0x4] ss:$8 sps:$4 sm:$0xff]   ;;  %v1773_v22 = vld [vmem:[#allocation8] ss:$8 sps:$4 sm:$0xff]  }
  0x8e   : > { %599 = vmatprep.subr.bf16.mxu1 %v1753_v6  ;;  %1566 = vmatpush3.bf16.msra.mxu0 %v1766_v10  ;;  %v503_v29 = vld [vmem:[%s2425_s5] sm:$0x3]  ;;  %v511_v33 = vsub.s32 1, %v506_v25  ;;  %vm662_vm2 = vcmask 261120   ;;  %s2023_s14 = smov 96   ;;  %vm725_vm3 = vcmask 1043456  }
  0x8f   : > { %1567 = vmatprep.subr.bf16.mxu0 %v2020_v0  ;;  %v508_v32 = vrot.slane %v503_v29, %v507_v28  ;;  %v1483_v34 = vld [vmem:[%s2423_s3] ss:$0 sm:$0xff]  ;;  %vm709_vm4 = vcmask 64512   ;;  %s2024_s24 = smov 64   ;;  %v1777_v28 = vld [vmem:[#allocation10 + $0x18] sm:$0xff]   ;;  %s2025_s4 = smov 32  }
  0x90   : > { %v512_v37 = vrot.slane %v503_v29, %v511_v33  ;;  %v1778_v29 = vld [vmem:[#allocation10 + $0x10] sm:$0xff]   ;;  %s1482_s18 = sshll.u32 %s2238_s6, 3  ;;  %s1527_s22 = sshll.u32 %s2093_s9, 7 }
  0x91   : > { %600 = vmatpush1.bf16.msra.mxu1 %v1755_v7  ;;  %s400_s29 = scalar_lea.vmem [#allocation11], %s1482_s18  ;;  %s2377_s13 = scalar_lea.hbm %s2428_s8, %s1527_s22 }
  0x92   : > { %601 = vmatprep.subr.bf16.mxu1 %v1756_v9  ;;  %1568 = vmatpush3.bf16.msra.mxu0 %v1770_v13  ;;  %v1776_v13 = vld [vmem:[#allocation10] sm:$0xff]   ;;  %s1345_s20 = sshll.u32 %s400_s29, 4  ;;  %s1332_s23 = scalar_lea.sflag [#allocation4], %s2238_s6  ;;  %s2379_s20 = int_to_ptr.vmem [resolvable:$true] %s1345_s20 }
  0x93   : > { %1569 = vmatprep.subr.bf16.mxu0 %v2020_v0  ;;  %s1933_s11 = scalar_lea.vmem %s2379_s20, 128  ;;  %p2454_p0 = scmp.ne.s32.totalorder %s2446_s26, 0 }
  0x94   : > { %p1934_p13 = scmp.ne.s32.totalorder %s2379_s20, %s1933_s11  ;;  %s2026_s9 = smov [#allocation11]  }
  0x95   : > { %602 = vmatpush1.bf16.msra.mxu1 %v1758_v11  ;;  %v1775_v11 = vld [vmem:[#allocation10 + $0x8] sm:$0xff]   ;;  %s1937_s25 = sshll.u32 %s2026_s9, 4  ;;  %s1938_s25 = int_to_ptr.vmem [resolvable:$false] %s1937_s25 }
  0x96   : > { %603 = vmatprep.subr.bf16.mxu1 %v1759_v12  ;;  %1570 = vmatpush3.bf16.msra.mxu0 %v1774_v16  ;;  %p1935_p5 = pnand %p1934_p13, %p2454_p0  ;;  %s1939_s16 = scalar_lea.vmem %s1938_s25, 256 }
  0x97   : > { %1575 = vmatprep.subr.bf16.mxu0 %v2020_v0  ;;  %p1940_p2 = scmp.lt.s32.totalorder %s2379_s20, %s1938_s25  ;;  %p1941_p9 = scmp.lt.s32.totalorder %s1939_s16, %s1933_s11 }
  0x98   : > { %p1936_p10 = pneg %p1935_p5 }
  0x99   : > { %604 = vmatpush1.bf16.msra.mxu1 %v1761_v14  ;;  %1572 = vmatmul.mubr.msk.bf16.vlgmr.msra.gmra.mxu0 %vm443_vm1, %v402_v19  ;;  %p1942_p1 = por %p1941_p9, %p1940_p2 }
  0x9a   : > { %605 = vmatprep.subr.bf16.mxu1 %v1763_v15  ;;  %1577 = vmatprep.mubr.msk.bf16.mxu0 %vm2022_vm0, %v2020_v0 }
  0x9b   : > { %p1943_p4 = pnand %p1942_p1, %p1936_p10 }
  0x9d   : > { %606 = vmatpush1.bf16.msra.mxu1 %v1765_v17 }
  0x9e   : > { %607 = vmatprep.subr.bf16.mxu1 %v1767_v18 }
  0xa1   : > { %608 = vmatpush1.bf16.msra.mxu1 %v1769_v20 }
  0xa2   : > { %609 = vmatprep.subr.bf16.mxu1 %v1771_v21 }
  0xa5   : > { %610 = vmatpush1.bf16.msra.mxu1 %v1773_v22 }
  0xa6   : > { %1595 = vmatprep.subr.bf16.mxu1 %v2020_v0 }
  0xa8   : > { %628 = vmatmul.mubr.bf16.vlgmr.msra.gmra.mxu1 %v403_v23 }
  0xa9   : > { %1597 = vmatprep.mubr.msk.bf16.mxu1 %vm2022_vm0, %v2020_v0 }
 0x159   : > { %v481_v26 = vpop.f32.mrf.mxu0 }
 0x15a   : > { %v482_v38 = vadd.f32 %v1483_v34, %v481_v26 }
 0x15b   : > { %v1573_v27 = vpop.f32.mrf.mxu0 }
 0x15c   : > { %v2285_v43 = vpack.c.bf16 %v482_v38, %v482_v38 }
 0x15d   : > { %v484_v30 = vpop.f32.mrf.mxu0 }
 0x15f   : > { %v1574_v31 = vpop.f32.mrf.mxu0 }
 0x168   : > { %v629_v35 = vpop.f32.mrf.mxu1 }
 0x169   : > { %v630_v36 = vadd.f32 %v629_v35, %v508_v32 }
 0x16a   : > { %v631_v39 = vpop.f32.mrf.mxu1 }
 0x16b   : > { %v2283_v40 = vpack.c.bf16 %v630_v36, %v630_v36  ;;  %v632_v42 = vadd.f32 %v631_v39, %v512_v37 }
 0x16c   : > { %v633_v41 = vpop.f32.mrf.mxu1 }
 0x16d   : > { %830 = vrot.lane.b32.xlu0 %v2283_v40, %s2023_s14  ;;  %v667_v44 = vsel %vm662_vm2, %v2283_v40, 0  ;;  %v2292_v46 = vpack.c.bf16 %v632_v42, %v632_v42 }
 0x16e   : > { %v634_v45 = vpop.f32.mrf.mxu1  ;;  %1576 = vmatpush3.bf16.xpose.msra.mxu0 %v667_v44 }
 0x16f   : > { %1581 = vmatprep.subr.bf16.mxu0 %v2020_v0  ;;  %v727_v47 = vsel %vm725_vm3, %v2292_v46, 0 }
 0x171   : > { %827 = vrot.lane.b32.xlu0 %v2285_v43, %s2023_s14 }
 0x175   : > { %1578 = vmatmul.mubr.msk.bf16.vlgmr.msra.gmra.mxu0 %vm662_vm2, %v2285_v43 }
 0x176   : > { %1582 = vmatpush3.bf16.msra.mxu0 %v727_v47  ;;  %1583 = vmatprep.mubr.msk.bf16.mxu0 %vm2022_vm0, %v2020_v0 }
 0x177   : > { %1587 = vmatprep.subr.bf16.mxu0 %v2020_v0 }
 0x1df   : > { %v831_v48 = vpop.permute.xlu0 %830 }
 0x1e0   : > { %v836_v49 = vsel %vm662_vm2, %v831_v48, 0 }
 0x1e1   : > { %1596 = vmatpush3.bf16.xpose.msra.mxu1 %v836_v49 }
 0x1e2   : > { %1607 = vmatprep.subr.bf16.mxu1 %v2020_v0 }
 0x1e3   : > { %v828_v50 = vpop.permute.xlu0 %827 }
 0x1e8   : > { %1598 = vmatmul.mubr.msk.bf16.vlgmr.msra.gmra.mxu1 %vm662_vm2, %v828_v50 }
 0x1e9   : > { %1611 = vmatprep.mubr.msk.bf16.mxu1 %vm2022_vm0, %v2020_v0  ;;  %1608 = vmatpush3.bf16.msra.mxu1 %v1777_v28 }
 0x1ea   : > { %1609 = vmatprep.subr.bf16.mxu1 %v2020_v0 }
 0x1ed   : > { %1610 = vmatpush3.bf16.msra.mxu1 %v1778_v29 }
 0x1ee   : > { %1621 = vmatprep.subr.bf16.mxu1 %v2020_v0 }
 0x235   : > { %v703_v51 = vpop.f32.mrf.mxu0 }
 0x236   : > { %v710_v52 = vsel %vm709_vm4, %v703_v51, -inf }
 0x237   : > { %711 = vmax.xlane.f32.xlu1 %v710_v52  ;;  %v1579_v53 = vpop.f32.mrf.mxu0 }
 0x239   : > { %v706_v54 = vpop.f32.mrf.mxu0 }
 0x23a   : > { %v1505_v54 = vld [vmem:[%s2427_s7] ss:$0 sm:$0xff] }
 0x23b   : > { %v1580_v55 = vpop.f32.mrf.mxu0 }
 0x2a8   : > { %v872_v56 = vpop.f32.mrf.mxu1 }
 0x2a9   : > { %v878_v57 = vsel %vm709_vm4, %v872_v56, -inf }
 0x2aa   : > { %879 = vmax.xlane.f32.xlu0 %v878_v57  ;;  %v1599_v58 = vpop.f32.mrf.mxu1 }
 0x2ac   : > { %v875_v59 = vpop.f32.mrf.mxu1 }
 0x2ae   : > { %v1600_v60 = vpop.f32.mrf.mxu1 }
 0x2c0   : > { %1058 = vrot.lane.b32.xlu0 %v2292_v46, %s2024_s24  ;;  %v712_v61 = vpop.xlane.xlu1 %711 }
 0x2c1   : > { %v713_v62 = vsub.f32 %v703_v51, %v712_v61  ;;  %v1779_v61 = vld [vmem:[#allocation10 + $0x28] sm:$0xff]  }
 0x2c3   : > { %v714_v63 = vmul.f32 1.442695, %v713_v62 }
 0x2c5   : > { %1783 = vpow2.f32 %v714_v63 }
 0x2d2   : > { %v1784_v1 = vpop.eup %1783 }
 0x2d3   : > { %v716_v2 = vsel %vm709_vm4, %v1784_v1, 0.0 }
 0x2d4   : > { %717 = vadd.xlane.f32.xlu1 %v716_v2 }
 0x2e5   : > { %891 = vrot.lane.b32.xlu1 %v2292_v46, %s2023_s14 }
 0x333   : > { %v880_v3 = vpop.xlane.xlu0 %879 }
 0x334   : > { %v881_v4 = vsub.f32 %v872_v56, %v880_v3 }
 0x336   : > { %v882_v5 = vmul.f32 1.442695, %v881_v4  ;;  %v1780_v4 = vld [vmem:[#allocation10 + $0x20] sm:$0xff]  }
 0x337   : > { %v1059_v34 = vpop.permute.xlu0 %1058 }
 0x338   : > { %1785 = vpow2.f32 %v882_v5  ;;  %v1064_v38 = vsel %vm725_vm3, %v1059_v34, 0 }
 0x345   : > { %v1786_v6 = vpop.eup %1785 }
 0x346   : > { %v884_v7 = vsel %vm709_vm4, %v1786_v6, 0.0 }
 0x347   : > { %885 = vadd.xlane.f32.xlu1 %v884_v7 }
 0x358   : > { %998 = vrot.lane.b32.xlu1 %v2283_v40, %s2024_s24 }
 0x35c   : > { %996 = vrot.lane.b32.xlu1 %v2285_v43, %s2024_s24 }
 0x35d   : > { %v718_v8 = vpop.xlane.xlu1 %717 }
 0x35e   : > { %1787 = vrcp.f32 %v718_v8 }
 0x361   : > { %v892_v14 = vpop.permute.xlu1 %891 }
 0x362   : > { %v897_v20 = vsel %vm725_vm3, %v892_v14, 0 }
 0x36b   : > { %v1788_v9 = vpop.eup %1787 }
 0x36c   : > { %v720_v10 = vmul.f32 %v1788_v9, %v1784_v1 }
 0x36e   : > { %v721_v12 = vpack.c.bf16 %v720_v10, %v720_v10 }
 0x370   : > { %1584 = vmatmul.mubr.msk.bf16.vlgmr.msra.gmra.mxu0 %vm709_vm4, %v721_v12 }
 0x371   : > { %1588 = vmatpush3.bf16.msra.mxu0 %v1775_v11  ;;  %1591 = vmatprep.mubr.msk.bf16.mxu0 %vm2022_vm0, %v2020_v0 }
 0x372   : > { %1589 = vmatprep.subr.bf16.mxu0 %v2020_v0 }
 0x375   : > { %1590 = vmatpush3.bf16.msra.mxu0 %v1776_v13 }
 0x376   : > { %1601 = vmatprep.subr.bf16.mxu0 %v2020_v0 }
 0x3d0   : > { %v886_v15 = vpop.xlane.xlu1 %885 }
 0x3d1   : > { %1789 = vrcp.f32 %v886_v15 }
 0x3d4   : > { %v999_v24 = vpop.permute.xlu1 %998 }
 0x3d5   : > { %v1004_v26 = vsel %vm662_vm2, %v999_v24, 0 }
 0x3d8   : > { %v997_v27 = vpop.permute.xlu1 %996 }
 0x3de   : > { %v1790_v18 = vpop.eup %1789 }
 0x3df   : > { %v888_v22 = vmul.f32 %v1790_v18, %v1786_v6 }
 0x3e1   : > { %v889_v25 = vpack.c.bf16 %v888_v22, %v888_v22 }
 0x430   : > { %v763_v16 = vpop.f32.mrf.mxu0 }
 0x431   : > { %v769_v17 = vpack.c.bf16 %v763_v16, %v763_v16 }
 0x432   : > { %v1585_v19 = vpop.f32.mrf.mxu0 }
 0x433   : > { %1592 = vmatmul.mubr.msk.bf16.vlgmr.msra.gmra.mxu0 %vm662_vm2, %v769_v17 }
 0x434   : > { %1602 = vmatpush3.bf16.msra.mxu0 %v897_v20  ;;  %v766_v21 = vpop.f32.mrf.mxu0  ;;  %1603 = vmatprep.mubr.msk.bf16.mxu0 %vm2022_vm0, %v2020_v0 }
 0x435   : > { %1615 = vmatprep.subr.bf16.mxu0 %v2020_v0  ;;  %v1781_v21 = vld [vmem:[#allocation10 + $0x38] sm:$0xff]  }
 0x436   : > { %v1586_v23 = vpop.f32.mrf.mxu0 }
 0x43b   : > { %1604 = vmatmul.mubr.msk.bf16.vlgmr.msra.gmra.mxu0 %vm709_vm4, %v889_v25 }
 0x43c   : > { %1616 = vmatpush3.bf16.xpose.msra.mxu0 %v1004_v26  ;;  %1617 = vmatprep.mubr.msk.bf16.mxu0 %vm2022_vm0, %v2020_v0 }
 0x43d   : > { %1627 = vmatprep.subr.bf16.mxu0 %v2020_v0 }
 0x443   : > { %1618 = vmatmul.mubr.msk.bf16.vlgmr.msra.gmra.mxu0 %vm662_vm2, %v997_v27 }
 0x444   : > { %1631 = vmatprep.mubr.msk.bf16.mxu0 %vm2022_vm0, %v2020_v0  ;;  %1628 = vmatpush3.bf16.msra.mxu0 %v1779_v61 }
 0x445   : > { %1629 = vmatprep.subr.bf16.mxu0 %v2020_v0 }
 0x448   : > { %1630 = vmatpush3.bf16.msra.mxu0 %v1780_v4 }
 0x449   : > { %1641 = vmatprep.subr.bf16.mxu0 %v2020_v0 }
 0x4f3   : > { %v819_v30 = vpop.f32.mrf.mxu0 }
 0x4f4   : > { %v825_v55 = vadd.f32 %v1505_v54, %v819_v30 }
 0x4f5   : > { %v1593_v31 = vpop.f32.mrf.mxu0 }
 0x4f6   : > { %v1782_v31 = vld [vmem:[#allocation10 + $0x30] sm:$0xff]  }
 0x4f7   : > { %v822_v32 = vpop.f32.mrf.mxu0 }
 0x4f9   : > { %v1594_v33 = vpop.f32.mrf.mxu0 }
 0x4fb   : > { %v933_v35 = vpop.f32.mrf.mxu0 }
 0x4fc   : > { %v939_v36 = vpack.c.bf16 %v933_v35, %v933_v35 }
 0x4fd   : > { %v1605_v37 = vpop.f32.mrf.mxu0 }
 0x4fe   : > { %1612 = vmatmul.mubr.msk.bf16.vlgmr.msra.gmra.mxu1 %vm662_vm2, %v939_v36 }
 0x4ff   : > { %1622 = vmatpush3.bf16.msra.mxu1 %v1064_v38  ;;  %v936_v39 = vpop.f32.mrf.mxu0  ;;  %1623 = vmatprep.mubr.msk.bf16.mxu1 %vm2022_vm0, %v2020_v0 }
 0x500   : > { %1635 = vmatprep.subr.bf16.mxu1 %v2020_v0 }
 0x501   : > { %v1606_v41 = vpop.f32.mrf.mxu0 }
 0x503   : > { %v1040_v42 = vpop.f32.mrf.mxu0 }
 0x504   : > { %v1046_v44 = vsel %vm709_vm4, %v1040_v42, -inf }
 0x505   : > { %1047 = vmax.xlane.f32.xlu1 %v1046_v44  ;;  %v1619_v45 = vpop.f32.mrf.mxu0 }
 0x507   : > { %v1043_v47 = vpop.f32.mrf.mxu0 }
 0x509   : > { %v1620_v48 = vpop.f32.mrf.mxu0 }
 0x58e   : > { %v1048_v49 = vpop.xlane.xlu1 %1047 }
 0x58f   : > { %v1049_v50 = vsub.f32 %v1040_v42, %v1048_v49 }
 0x591   : > { %v1050_v51 = vmul.f32 1.442695, %v1049_v50 }
 0x593   : > { %1791 = vpow2.f32 %v1050_v51 }
 0x5a0   : > { %v1792_v52 = vpop.eup %1791 }
 0x5a1   : > { %v1052_v53 = vsel %vm709_vm4, %v1792_v52, 0.0 }
 0x5a2   : > { %1053 = vadd.xlane.f32.xlu0 %v1052_v53 }
 0x5b8   : > { %1165 = vrot.lane.b32.xlu0 %v2283_v40, %s2025_s4 }
 0x5bc   : > { %1163 = vrot.lane.b32.xlu0 %v2285_v43, %s2025_s4 }
 0x5be   : > { %v989_v56 = vpop.f32.mrf.mxu1 }
 0x5bf   : > { %v995_v57 = vadd.f32 %v989_v56, %v825_v55 }
 0x5c0   : > { %v1613_v58 = vpop.f32.mrf.mxu1 }
 0x5c2   : > { %v992_v59 = vpop.f32.mrf.mxu1 }
 0x5c4   : > { %v1614_v60 = vpop.f32.mrf.mxu1 }
 0x62b   : > { %v1054_v62 = vpop.xlane.xlu0 %1053 }
 0x62c   : > { %1793 = vrcp.f32 %v1054_v62 }
 0x62f   : > { %v1166_v1 = vpop.permute.xlu0 %1165 }
 0x630   : > { %v1171_v3 = vsel %vm662_vm2, %v1166_v1, 0 }
 0x633   : > { %v1164_v43 = vpop.permute.xlu0 %1163 }
 0x639   : > { %v1794_v40 = vpop.eup %1793 }
 0x63a   : > { %v1056_v63 = vmul.f32 %v1794_v40, %v1792_v52 }
 0x63c   : > { %v1057_v2 = vpack.c.bf16 %v1056_v63, %v1056_v63 }
 0x63e   : > { %1624 = vmatmul.mubr.msk.bf16.vlgmr.msra.gmra.mxu1 %vm709_vm4, %v1057_v2 }
 0x63f   : > { %1636 = vmatpush3.bf16.xpose.msra.mxu1 %v1171_v3  ;;  %1637 = vmatprep.mubr.msk.bf16.mxu1 %vm2022_vm0, %v2020_v0 }
 0x640   : > { %1647 = vmatprep.subr.bf16.mxu1 %v2020_v0 }
 0x646   : > { %1638 = vmatmul.mubr.msk.bf16.vlgmr.msra.gmra.mxu1 %vm662_vm2, %v1164_v43 }
 0x647   : > { %1651 = vmatprep.mubr.msk.bf16.mxu1 %vm2022_vm0, %v2020_v0  ;;  %1648 = vmatpush3.bf16.msra.mxu1 %v1781_v21 }
 0x648   : > { %1649 = vmatprep.subr.bf16.mxu1 %v2020_v0 }
 0x64b   : > { %1650 = vmatpush3.bf16.msra.mxu1 %v1782_v31 }
 0x6fe   : > { %v1100_v5 = vpop.f32.mrf.mxu1 }
 0x6ff   : > { %v1106_v6 = vpack.c.bf16 %v1100_v5, %v1100_v5 }
 0x700   : > { %v1625_v7 = vpop.f32.mrf.mxu1 }
 0x701   : > { %1632 = vmatmul.mubr.msk.bf16.vlgmr.msra.gmra.mxu0 %vm662_vm2, %v1106_v6 }
 0x702   : > { %v1103_v8 = vpop.f32.mrf.mxu1  ;;  %1643 = vmatprep.mubr.msk.bf16.mxu0 %vm2022_vm0, %v2020_v0 }
 0x704   : > { %v1626_v9 = vpop.f32.mrf.mxu1 }
 0x706   : > { %v1207_v10 = vpop.f32.mrf.mxu1 }
 0x707   : > { %v1213_v11 = vsel %vm709_vm4, %v1207_v10, -inf }
 0x708   : > { %1214 = vmax.xlane.f32.xlu0 %v1213_v11  ;;  %v1639_v12 = vpop.f32.mrf.mxu1 }
 0x70a   : > { %v1210_v13 = vpop.f32.mrf.mxu1 }
 0x70c   : > { %v1640_v14 = vpop.f32.mrf.mxu1 }
 0x791   : > { %v1215_v15 = vpop.xlane.xlu0 %1214 }
 0x792   : > { %v1216_v16 = vsub.f32 %v1207_v10, %v1215_v15 }
 0x794   : > { %v1217_v17 = vmul.f32 1.442695, %v1216_v16 }
 0x796   : > { %1795 = vpow2.f32 %v1217_v17 }
 0x7a3   : > { %v1796_v18 = vpop.eup %1795 }
 0x7a4   : > { %v1219_v19 = vsel %vm709_vm4, %v1796_v18, 0.0 }
 0x7a5   : > { %1220 = vadd.xlane.f32.xlu1 %v1219_v19 }
 0x7b6   : > { %1225 = vrot.lane.b32.xlu1 %v2292_v46, %s2025_s4 }
 0x7c1   : > { %v1156_v20 = vpop.f32.mrf.mxu0 }
 0x7c2   : > { %v1162_v22 = vadd.f32 %v1156_v20, %v995_v57 }
 0x7c3   : > { %v1633_v23 = vpop.f32.mrf.mxu0 }
 0x7c5   : > { %v1159_v24 = vpop.f32.mrf.mxu0 }
 0x7c7   : > { %v1634_v25 = vpop.f32.mrf.mxu0 }
 0x82e   : > { %v1221_v26 = vpop.xlane.xlu1 %1220 }
 0x82f   : > { %1797 = vrcp.f32 %v1221_v26 }
 0x832   : > { %v1226_v27 = vpop.permute.xlu1 %1225 }
 0x833   : > { %v1231_v28 = vsel %vm725_vm3, %v1226_v27, 0 }
 0x834   : > { %1642 = vmatpush3.bf16.msra.mxu0 %v1231_v28 }
 0x83c   : > { %v1798_v29 = vpop.eup %1797 }
 0x83d   : > { %v1223_v30 = vmul.f32 %v1798_v29, %v1796_v18 }
 0x83f   : > { %v1224_v46 = vpack.c.bf16 %v1223_v30, %v1223_v30 }
 0x841   : > { %1644 = vmatmul.mubr.msk.bf16.vlgmr.msra.gmra.mxu0 %vm709_vm4, %v1224_v46 }
 0x901   : > { %v1267_v32 = vpop.f32.mrf.mxu0 }
 0x902   : > { %v1273_v33 = vpack.c.bf16 %v1267_v32, %v1267_v32 }
 0x903   : > { %v1645_v0 = vpop.f32.mrf.mxu0 }
 0x904   : > { %1652 = vmatmul.mubr.msk.bf16.vlgmr.msra.gmra.mxu1 %vm662_vm2, %v1273_v33 }
 0x905   : > { %v1270_v34 = vpop.f32.mrf.mxu0 }
 0x907   : > { %v1646_v35 = vpop.f32.mrf.mxu0 }
 0x9c4   : > { %v1323_v36 = vpop.f32.mrf.mxu1 }
 0x9c5   : > { %v1329_v37 = vadd.f32 %v1323_v36, %v1162_v22 }
 0x9c6   : > { %v1653_v38 = vpop.f32.mrf.mxu1 }
 0x9c7   : > { %1330 = vst [vmem:[%s400_s29] sm:$0xff] %v1329_v37 }
 0x9c8   : > { %v1326_v39 = vpop.f32.mrf.mxu1 }
 0x9c9   : > { %1946 = shalt.err (!%p1943_p4)
}
 0x9ca   : > { %s1947_s10 = scalar_lea.hbm %s2377_s13, 128  ;;  %s1951_s24 = scalar_lea.hbm %s2428_s8, 256 }
 0x9cb   : > { %p1948_p6 = scmp.ne.s32.totalorder %s2377_s13, %s1947_s10  ;;  %p1952_p8 = scmp.lt.s32.totalorder %s2377_s13, %s2428_s8 }
 0x9cc   : > { %p1953_p3 = scmp.lt.s32.totalorder %s1951_s24, %s1947_s10 }
 0x9cd   : > { %p1949_p7 = pnand %p1948_p6, %p2454_p0 }
 0x9ce   : > { %p1954_p12 = por %p1953_p3, %p1952_p8 }
 0x9cf   : > { %p1950_p11 = pneg %p1949_p7 }
 0x9d1   : > { %p1955_p13 = pnand %p1954_p12, %p1950_p11 }
 0x9d3   : > { %1958 = shalt.err (!%p1955_p13)
}
 0x9d4   : > { %1671 = dma.vmem_to_hbm [thread:$0]  (%p2454_p0), %s2379_s20, 128, %s2377_s13, %s1332_s23   ;;  %v1654_v41 = vpop.f32.mrf.mxu1 }
 0x9d5 PF: > { %s1357_s21 = sand.u32 1, %s1997_s27   ;;  %p2455_p5 = scmp.ne.s32.totalorder %s2439_s12, 0 }
 0x9d6   : > { %p2456_p10 = scmp.ge.s32.totalorder %s2009_s30, 2  ;;  %s1358_s18 = scalar_lea.sflag [#allocation4], %s1357_s21 }
 0x9d8   : > { %p1691_p2 = pnand %p2456_p10, %p2455_p5 }
 0x9da   : > { %p1692_p9 = pneg %p1691_p2 }
 0x9dc   : > { %1992 = dma.done.wait (%p1692_p9), %s1358_s18, 128  }
 0x9dd   : > { %1994 = vsyncadd (%p1692_p9), %s1358_s18, 4294967168  ;;  %s2457_s22 = sld [smem:[#allocation17_spill]]  ;;  %p25_p1 = scmp.ge.s32.totalorder %s2147_s19, 4  }
 0x9de   : > { %s2458_s29 = sld [smem:[#allocation18_spill]]  ;;  %s2459_s27 = smov %s2001_s28 }
 0x9df   : > { %s2461_s30 = smov %s2147_s19  ;;  %27 = sbr.rel (!%p25_p1) target bundleno = 12 (0xc), region = 122 }
 0x9e3   : > { %s2460_s28 = smov %s2457_s22 }
 0x9e4   :  { %1363 = vsyncpa [#allocation3], 1 }
 0x9e5   :  { %1365 = vsyncpa [#allocation3 + $0x1], 1 }
 0x9e6   :  { %1366 = vsyncpa [#allocation6], 1 }
 0x9e7   :  { %1368 = vsyncpa [#allocation6 + $0x1], 1 }
 0x9e8   :  { %1369 = vsyncpa [#allocation9], 1 }
 0x9e9   :  { %1370 = vsyncpa [#allocation4], 1 }
 0x9ea   :  { %1372 = vsyncpa [#allocation4 + $0x1], 1 }

</bundles_post_ra>
